<compile_context>
chip_gen: v5e
topology: v5e:2x2
jax: 0.10.0
libtpu: 0.0.40
codegen_flags: <defaults>
</compile_context>

<pallas_src>
import functools

import jax
import jax.numpy as jnp
from jax import lax
from jax.experimental import pallas as pl
from jax.experimental.pallas import tpu as pltpu


def _round_up(a, b):
    return ((a + b - 1) // b) * b


def _cdiv(a, b):
    return (a + b - 1) // b


def _tpu_generation():
    """Best-effort TPU generation (e.g. 5, 6, 7); 0 if unknown."""
    try:
        kind = jax.devices()[0].device_kind.lower()
    except Exception:
        return 0
    for g in (7, 6, 5, 4, 3, 2):
        if f"v{g}" in kind:
            return g
    return 0


# ---------------- kernels ----------------

def _fbn_kernel_resident(x_ref, sb_ref, o_ref, *, tr):
    # sb_ref holds the whole packed (R_pad, 2) scale/shift table, resident in
    # VMEM across all grid steps; slice the rows belonging to this row block.
    i = pl.program_id(0)
    r0 = pl.multiple_of(i * tr, tr)
    sb = sb_ref[pl.ds(r0, tr), :]             # (TR, 2)
    scale = sb[:, 0:1]                         # (TR, 1)
    shift = sb[:, 1:2]                         # (TR, 1)
    x = x_ref[...].astype(sb.dtype)            # (TR, TW)
    o_ref[...] = (x * scale + shift).astype(o_ref.dtype)


def _fbn_kernel_blocked(x_ref, sb_ref, o_ref):
    sb = sb_ref[...]                           # (TR, 2)
    scale = sb[:, 0:1]
    shift = sb[:, 1:2]
    x = x_ref[...].astype(sb.dtype)
    o_ref[...] = (x * scale + shift).astype(o_ref.dtype)


def frozen_batchnorm2d(x, weight, bias, running_mean, running_var, eps=1e-5):
    """x: (N, C, H, W); params: (C,). Returns (N, C, H, W) in x.dtype."""
    N, C, H, W = x.shape
    R, HW = N * C, H * W
    itemsize = jnp.dtype(x.dtype).itemsize
    gen = _tpu_generation()
    n_tc = 2 if gen >= 7 else 1            # v7x: 2 TensorCores/chip; v5e/v6e: 1

    # ---- compute dtype: bf16-native where the VPU supports it (v6e+) ----
    if x.dtype == jnp.bfloat16 and gen >= 6:
        cdt = jnp.bfloat16
    else:
        cdt = jnp.float32

    # ---- fold buffers into per-channel scale/shift (f32 fold, wrapper-side) ----
    w = weight.astype(jnp.float32)
    b = bias.astype(jnp.float32)
    rm = running_mean.astype(jnp.float32)
    rv = running_var.astype(jnp.float32)
    scale_c = w * lax.rsqrt(rv + jnp.float32(eps))
    shift_c = b - rm * scale_c
    sb_c = jnp.stack([scale_c, shift_c], axis=-1).astype(cdt)   # (C, 2)

    # ---- tiling ----
    # Lane tile: full (unpadded) row unless a single row exceeds 64K lanes.
    max_tw = 65536
    if HW <= max_tw:
        TW, n_col = HW, 1                  # full-extent last dim: legal, no pad
    else:
        TW = _round_up(_cdiv(HW, _cdiv(HW, max_tw)), 128)
        n_col = _cdiv(HW, TW)              # Pallas masks the ragged edge block

    # Row tile: dtype-native sublane multiple, targeting ~4 MiB x-blocks.
    sub = {1: 32, 2: 16}.get(itemsize, 8)
    target_block_bytes = 4 * 1024 * 1024
    tr = max(sub, (target_block_bytes // max(1, TW * itemsize)) // sub * sub)
    if n_tc > 1:
        # Balance row blocks across TensorCores when the total grid is small.
        n_rb = _cdiv(R, tr)
        if n_rb * n_col < 8:
            n_rb = _round_up(max(n_rb, n_tc), n_tc)
            tr = max(sub, _round_up(_cdiv(R, n_rb), sub))
    TR = R if R <= tr else tr              # full-extent row block is also legal
    n_row = _cdiv(R, TR)
    R_pad = n_row * TR

    # ---- packed per-row params (tiny: R_pad * 2 elements) ----
    sb = jnp.tile(sb_c[None], (N, 1, 1)).reshape(R, 2)
    if R_pad != R:
        sb = jnp.pad(sb, ((0, R_pad - R), (0, 0)))

    # x is streamed directly (no pad / no slice): Pallas masks edge blocks.
    x2 = x.reshape(R, HW)

    grid = (n_row, n_col)
    x_spec = pl.BlockSpec((TR, TW), lambda i, j: (i, j))

    sb_item = jnp.dtype(cdt).itemsize
    sb_sub = 16 if sb_item == 2 else 8
    sb_vmem_est = _round_up(R_pad, sb_sub) * 128 * sb_item      # lane-padded size
    if sb_vmem_est <= 4 * 1024 * 1024:
        # Keep the whole scale/shift table resident in VMEM (one DMA total).
        sb_spec = pl.BlockSpec((R_pad, 2), lambda i, j: (0, 0))
        kernel = functools.partial(_fbn_kernel_resident, tr=TR)
    else:
        sb_spec = pl.BlockSpec((TR, 2), lambda i, j: (i, 0))
        kernel = _fbn_kernel_blocked

    out2 = pl.pallas_call(
        kernel,
        out_shape=jax.ShapeDtypeStruct((R, HW), x.dtype),
        grid_spec=pltpu.PrefetchScalarGridSpec(
            num_scalar_prefetch=0,
            grid=grid,
            in_specs=[x_spec, sb_spec],
            out_specs=x_spec,
        ),
        compiler_params=pltpu.CompilerParams(
            dimension_semantics=("parallel", "parallel"),
            # <= ~4 MiB in + ~4 MiB out (double-buffered) + <= 4 MiB resident
            # params: well under 32 MiB on every generation (v7x: 64 MiB phys).
            vmem_limit_bytes=32 * 1024 * 1024,
        ),
        cost_estimate=pl.CostEstimate(
            flops=2 * R * HW,
            transcendentals=0,
            bytes_accessed=int(2 * R * HW * itemsize + R_pad * 2 * sb_item),
        ),
    )(x2, sb)

    return out2.reshape(N, C, H, W)


if __name__ == "__main__":
    key = jax.random.PRNGKey(0)
    N, C, H, W = 2, 4, 16, 16

    kx, kw, kb, km, kv = jax.random.split(key, 5)
    x = jax.random.normal(kx, (N, C, H, W), dtype=jnp.float32)
    # Deterministic, non-trivial frozen buffers (module __init__ shapes: (C,)).
    weight = 1.0 + 0.1 * jax.random.normal(kw, (C,), dtype=jnp.float32)
    bias = 0.1 * jax.random.normal(kb, (C,), dtype=jnp.float32)
    running_mean = 0.2 * jax.random.normal(km, (C,), dtype=jnp.float32)
    running_var = jnp.abs(1.0 + 0.1 * jax.random.normal(kv, (C,), dtype=jnp.float32))

    out = frozen_batchnorm2d(x, weight, bias, running_mean, running_var)
    out = jax.block_until_ready(out)

    # Pure-JAX reference (mirrors the PyTorch forward exactly).
    eps = 1e-5
    scale = weight.reshape(1, -1, 1, 1) * jax.lax.rsqrt(
        running_var.reshape(1, -1, 1, 1) + eps)
    ref = x * scale + (bias.reshape(1, -1, 1, 1)
                       - running_mean.reshape(1, -1, 1, 1) * scale)
    assert out.shape == (N, C, H, W)
    assert out.dtype == x.dtype
    assert jnp.allclose(out, ref, atol=1e-5, rtol=1e-5)

    print("KERNEL_OK")
</pallas_src>

<mosaic_0001>
module attributes {stable_mosaic.version = 11 : i64} {
  func.func @_fbn_kernel_resident(%arg0: i32, %arg1: i32, %arg2: memref<8x256xf32, #tpu.memory_space<vmem>>, %arg3: memref<8x2xf32, #tpu.memory_space<vmem>>, %arg4: memref<8x256xf32, #tpu.memory_space<vmem>>) attributes {dimension_semantics = [#tpu.dimension_semantics<parallel>, #tpu.dimension_semantics<parallel>], iteration_bounds = array<i64: 1, 1>, scalar_prefetch = 0 : i64, scratch_operands = 0 : i64, tpu.core_type = #tpu.core_type<tc>, window_params = [{transform_indices = @transform_0, window_bounds = array<i64: 8, 256>}, {pipeline_mode = #tpu.pipeline_mode<synchronous>, transform_indices = @transform_1, window_bounds = array<i64: 8, 2>}, {transform_indices = @transform_2, window_bounds = array<i64: 8, 256>}]} {
    %c8_i32 = arith.constant 8 : i32
    %0 = arith.muli %arg0, %c8_i32 : i32
    %1 = tpu.assume_multiple %0, 8 : i32
    %2 = arith.index_cast %1 : i32 to index
    %c0 = arith.constant 0 : index
    %3 = vector.load %arg3[%2, %c0] : memref<8x2xf32, #tpu.memory_space<vmem>>, vector<8x2xf32>
    %4 = vector.extract_strided_slice %3 {offsets = [0, 0], sizes = [8, 1], strides = [1, 1]} : vector<8x2xf32> to vector<8x1xf32>
    %5 = vector.extract_strided_slice %3 {offsets = [0, 1], sizes = [8, 1], strides = [1, 1]} : vector<8x2xf32> to vector<8x1xf32>
    %c0_0 = arith.constant 0 : index
    %c0_1 = arith.constant 0 : index
    %6 = vector.load %arg2[%c0_0, %c0_1] : memref<8x256xf32, #tpu.memory_space<vmem>>, vector<8x256xf32>
    %7 = vector.broadcast %4 : vector<8x1xf32> to vector<8x256xf32>
    %8 = arith.mulf %6, %7 : vector<8x256xf32>
    %9 = vector.broadcast %5 : vector<8x1xf32> to vector<8x256xf32>
    %10 = arith.addf %8, %9 : vector<8x256xf32>
    %c0_2 = arith.constant 0 : index
    %c0_3 = arith.constant 0 : index
    %11 = vector.load %arg4[%c0_2, %c0_3] : memref<8x256xf32, #tpu.memory_space<vmem>>, vector<8x256xf32>
    tpu.vector_store %arg4[%c0_2, %c0_3], %10 {strides = array<i32>} : memref<8x256xf32, #tpu.memory_space<vmem>>, vector<8x256xf32>,
    return
  }
  func.func @transform_0(%arg0: i32, %arg1: i32) -> (i32, i32) {
    %c0_i32 = arith.constant 0 : i32
    return %arg0, %arg1 : i32, i32
  }
  func.func @transform_1(%arg0: i32, %arg1: i32) -> (i32, i32) {
    %c0_i32 = arith.constant 0 : i32
    %c0_i32_0 = arith.constant 0 : i32
    %c0_i32_1 = arith.constant 0 : i32
    return %c0_i32, %c0_i32_0 : i32, i32
  }
  func.func @transform_2(%arg0: i32, %arg1: i32) -> (i32, i32) {
    %c0_i32 = arith.constant 0 : i32
    return %arg0, %arg1 : i32, i32
  }
}

</mosaic_0001>

<bundles_post_ra>
// kernel: tpu_custom_call.1
= control target key start
LH: loop header
LB: loop body
LE: loop exit
PB: predicated region body
PF: predicated region fallthrough
CT: control target
= control target key end

     0   :  { %7 = vsyncpa [#allocation3], 0  ;;  %s149_s0 = inlined_call_operand.hbm [shape: f32[8,256], index: 0, kind: input, shape index: {}]   ;;  %s150_s1 = inlined_call_operand.vmem [shape: f32[8,2], index: 1, kind: input, shape index: {}]   ;;  %s151_s2 = inlined_call_operand.hbm [shape: f32[8,256], index: 2, kind: output, shape index: {}]  }
   0x1   :  { %8 = vsyncpa [#allocation4], 0  ;;  %s14_s11 = sshll.u32 %s149_s0, 4  ;;  %s121_s12 = smov [#allocation2]   ;;  %s15_s11 = int_to_ptr.hbm [resolvable:$true] %s14_s11 }
   0x2   :  { %s16_s13 = sshll.u32 %s121_s12, 4  ;;  %s17_s13 = int_to_ptr.vmem [resolvable:$true] %s16_s13 }
   0x3   :  { %19 = dma.hbm_to_vmem [thread:$0]  %s15_s11, 256, %s17_s13, [#allocation3]  }
   0x4   :  { %117 = dma.done.wait [#allocation3], 256  }
   0x5   :  { %118 = vsyncadd [#allocation3], 4294967040  ;;  %v122_v0 = vmov 0   ;;  %v28_v1 = vld [vmem:[%s150_s1] sm:$0xff]  ;;  %v123_v2 = vmov 1   ;;  %v30_v5 = vld [vmem:[#allocation2 + $0x8] sm:$0xff] }
   0x6   :  { %67 = vset.pattern.permute.xlu0 %v122_v0  ;;  %v29_v4 = vld [vmem:[#allocation2] sm:$0xff]  ;;  %s124_s0 = smov [#allocation5]   ;;  %s53_s19 = sshll.u32 %s151_s2, 4  ;;  %s54_s19 = int_to_ptr.hbm [resolvable:$true] %s53_s19 }
   0x7   :  { %33 = vperm.xlu0 %67, %v28_v1   ;;  %s51_s16 = sshll.u32 %s124_s0, 4  ;;  %s52_s16 = int_to_ptr.vmem [resolvable:$true] %s51_s16 }
   0xf   :  { %68 = vset.pattern.permute.xlu0 %v123_v2 }
  0x10   :  { %39 = vperm.xlu0 %68, %v28_v1  }
  0x79   :  { %v34_v3 = vpop.permute.xlu0 %33 }
  0x7a   :  { %v36_v6 = vmul.f32 %v34_v3, %v29_v4  ;;  %v37_v7 = vmul.f32 %v34_v3, %v30_v5 }
  0x82   :  { %v40_v8 = vpop.permute.xlu0 %39 }
  0x83   :  { %v42_v9 = vadd.f32 %v40_v8, %v36_v6  ;;  %v43_v10 = vadd.f32 %v40_v8, %v37_v7 }
  0x85   :  { %44 = vst [vmem:[#allocation5] sm:$0xff] %v42_v9 }
  0x86   :  { %45 = vst [vmem:[#allocation5 + $0x8] sm:$0xff] %v43_v10 }
  0x87   :  { %56 = dma.vmem_to_hbm [thread:$0]  %s52_s16, 256, %s54_s19, [#allocation4]  }
  0x88   :  { %119 = dma.done.wait [#allocation4], 256  }
  0x89   :  { %120 = vsyncadd [#allocation4], 4294967040 }
  0x8a   :  { %61 = vsyncpa [#allocation3], 1 }
  0x8b   :  { %62 = vsyncpa [#allocation4], 1 }

</bundles_post_ra>
